<compile_context>
chip_gen: v7x
topology: tpu7x:2x2x1
jax: 0.10.0
libtpu: 0.0.40
codegen_flags: <defaults>
</compile_context>

<pallas_src>
import functools
import math

import jax
import jax.numpy as jnp
from jax import lax
from jax.experimental import pallas as pl
from jax.experimental.pallas import tpu as pltpu


# ---------------------------------------------------------------------------
# Parameter (buffer) construction — mirrors the torch __init__.
# ---------------------------------------------------------------------------
def make_sinusoidal_pe(max_len: int, d_model: int, dtype=jnp.float32):
    """pe[pos, 0::2] = sin(pos * w_k), pe[pos, 1::2] = cos(pos * w_k)."""
    position = jnp.arange(max_len, dtype=jnp.float32)[:, None]           # [L, 1]
    div_term = jnp.exp(jnp.arange(0, d_model, 2, dtype=jnp.float32)
                       * (-math.log(10000.0) / d_model))                 # [D/2]
    ang = position * div_term                                            # [L, D/2]
    pe = jnp.zeros((max_len, d_model), jnp.float32)
    pe = pe.at[:, 0::2].set(jnp.sin(ang))
    pe = pe.at[:, 1::2].set(jnp.cos(ang))
    return pe.astype(dtype)


# ---------------------------------------------------------------------------
# Kernels
# ---------------------------------------------------------------------------
def _pe_add_kernel(x_ref, pe_ref, o_ref):
    # x_ref: [B, TS, D], pe_ref: [TS, D] -> broadcast add over batch.
    o_ref[...] = x_ref[...] + pe_ref[...][None, :, :]


def _uniform24_bits(shape, salt_u32):
    """Stateless counter-based PRNG: 24 uniform bits per element as int32.

    Uses only jnp/lax ops (iota, int mul/xor/shift) so it lowers identically on
    Mosaic and in interpret mode. salt_u32 is a uint32 scalar folding in the
    user seed and the grid step, making the stream unique per sequence tile.
    """
    i0 = lax.broadcasted_iota(jnp.int32, shape, 0).astype(jnp.uint32)
    i1 = lax.broadcasted_iota(jnp.int32, shape, 1).astype(jnp.uint32)
    i2 = lax.broadcasted_iota(jnp.int32, shape, 2).astype(jnp.uint32)
    h = (i0 * jnp.uint32(0xA511E9B3)
         ^ i1 * jnp.uint32(0x85EBCA77)
         ^ i2 * jnp.uint32(0xC2B2AE3D))
    h = h + salt_u32
    # splitmix-style finalizer
    h = h ^ (h >> jnp.uint32(16))
    h = h * jnp.uint32(0x7FEB352D)
    h = h ^ (h >> jnp.uint32(15))
    h = h * jnp.uint32(0x846CA68B)
    h = h ^ (h >> jnp.uint32(16))
    return (h >> jnp.uint32(8)).astype(jnp.int32)                        # U[0, 2^24)


def _pe_add_dropout_kernel(x_ref, pe_ref, o_ref, *, rate, base_seed):
    val = x_ref[...] + pe_ref[...][None, :, :]
    salt = (jnp.uint32(base_seed)
            + pl.program_id(0).astype(jnp.uint32) * jnp.uint32(0x9E3779B9))
    low24 = _uniform24_bits(val.shape, salt)
    keep = low24 >= jnp.int32(int(rate * (1 << 24)))                     # P(keep) = 1 - rate
    scale = jnp.asarray(1.0 / (1.0 - rate), val.dtype)
    o_ref[...] = jnp.where(keep, val * scale, jnp.zeros_like(val)).astype(o_ref.dtype)


# ---------------------------------------------------------------------------
# Tiling heuristics
# ---------------------------------------------------------------------------
def _choose_seq_tile(seq_len, batch, d_model, itemsize,
                     vmem_block_budget=2 * 1024 * 1024, min_blocks=2):
    """Seq-tile size: multiple of 8 (or the full axis), divides seq_len, keeps
    B*TS*D under the per-block budget, and when the sequence is long enough
    gives >= min_blocks blocks so the parallel grid axis can be sharded across
    v7x's two TensorCores and the DMA streams double-buffer."""
    if seq_len % 8 != 0:
        return seq_len                       # full axis is always a legal block
    bytes_per_row = batch * d_model * itemsize
    cap = max(8, (vmem_block_budget // max(1, bytes_per_row)) // 8 * 8)
    want = min(seq_len, cap)
    if seq_len // want < min_blocks and seq_len >= min_blocks * 8:
        want = max(8, (seq_len // min_blocks) // 8 * 8)
    for ts in range(want - want % 8, 7, -8):
        if seq_len % ts == 0:
            return ts
    return seq_len


# ---------------------------------------------------------------------------
# Wrapper (the module's forward pass)
# ---------------------------------------------------------------------------
def positional_encoding_forward(x, pe, *, dropout_rate=0.1, train=False, seed=0):
    """x: [B, S, D] or [S, D]; pe: [max_len, D] sinusoidal table."""
    squeeze_batch = (x.ndim == 2)
    if squeeze_batch:
        x = x[None]                          # [1, S, D]; same math as the 2-D branch
    if x.ndim != 3:
        # TODO(synk): torch's fallback branch adds pe[:len] with its [L,1,D] layout
        # for other ranks; not implemented here.
        raise NotImplementedError("positional_encoding_forward supports 2-D or 3-D inputs")

    B, S, D = x.shape
    assert pe.shape[0] >= S and pe.shape[1] == D, "pe buffer too small for input"
    pe_s = pe[:S].astype(x.dtype)            # [S, D]

    TS = _choose_seq_tile(S, B, D, x.dtype.itemsize)
    grid = (S // TS,)

    apply_dropout = bool(train) and float(dropout_rate) > 0.0
    if apply_dropout:
        assert 0.0 < float(dropout_rate) < 1.0
        kernel = functools.partial(_pe_add_dropout_kernel,
                                   rate=float(dropout_rate),
                                   base_seed=int(seed) & 0xFFFFFFFF)
    else:
        kernel = _pe_add_kernel

    out = pl.pallas_call(
        kernel,
        out_shape=jax.ShapeDtypeStruct((B, S, D), x.dtype),
        grid_spec=pl.GridSpec(
            grid=grid,
            in_specs=[
                pl.BlockSpec((B, TS, D), lambda s: (0, s, 0)),   # x slab
                pl.BlockSpec((TS, D), lambda s: (s, 0)),         # pe slab (batch-invariant)
            ],
            out_specs=pl.BlockSpec((B, TS, D), lambda s: (0, s, 0)),
        ),
        compiler_params=pltpu.CompilerParams(
            dimension_semantics=("parallel",)),
    )(x, pe_s)

    return out[0] if squeeze_batch else out


# ---------------------------------------------------------------------------
# Demo / self-check
# ---------------------------------------------------------------------------
if __name__ == "__main__":
    d_model = 128          # lane-dense model dim
    max_len = 512
    batch, seq = 4, 16
    dropout_p = 0.1

    key = jax.random.PRNGKey(0)
    kx, k2 = jax.random.split(key)
    x3 = jax.random.normal(kx, (batch, seq, d_model), jnp.float32)
    pe = make_sinusoidal_pe(max_len, d_model)

    # Eval mode (dropout inactive): exact check against a pure-JAX reference.
    out3 = jax.block_until_ready(
        positional_encoding_forward(x3, pe, dropout_rate=dropout_p, train=False))
    ref3 = x3 + pe[:seq][None, :, :]
    assert out3.shape == (batch, seq, d_model)
    assert jnp.allclose(out3, ref3, atol=1e-6, rtol=1e-6)

    # 2-D input path [seq, d_model].
    x2 = jax.random.normal(k2, (seq, d_model), jnp.float32)
    out2 = jax.block_until_ready(positional_encoding_forward(x2, pe, train=False))
    assert out2.shape == (seq, d_model)
    assert jnp.allclose(out2, x2 + pe[:seq], atol=1e-6, rtol=1e-6)

    # Train mode: in-kernel stateless dropout (check statistics + determinism).
    outd = jax.block_until_ready(
        positional_encoding_forward(x3, pe, dropout_rate=dropout_p, train=True, seed=1234))
    outd2 = jax.block_until_ready(
        positional_encoding_forward(x3, pe, dropout_rate=dropout_p, train=True, seed=1234))
    assert outd.shape == (batch, seq, d_model)
    keep_frac = float(jnp.mean((outd != 0.0).astype(jnp.float32)))
    assert 0.80 < keep_frac < 0.99, keep_frac   # expected ~0.9 for p=0.1
    assert jnp.array_equal(outd, outd2)          # same seed -> identical mask
    # Kept elements equal (x + pe) / (1 - p).
    kept = outd != 0.0
    assert jnp.allclose(jnp.where(kept, outd, 0.0),
                        jnp.where(kept, ref3 / (1.0 - dropout_p), 0.0),
                        atol=1e-5, rtol=1e-5)

    print("KERNEL_OK")
</pallas_src>

<mosaic_0001>
module attributes {stable_mosaic.version = 11 : i64} {
  func.func @_pe_add_kernel(%arg0: i32, %arg1: memref<4x8x128xf32, #tpu.memory_space<vmem>>, %arg2: memref<8x128xf32, #tpu.memory_space<vmem>>, %arg3: memref<4x8x128xf32, #tpu.memory_space<vmem>>) attributes {dimension_semantics = [#tpu.dimension_semantics<parallel>], iteration_bounds = array<i64: 2>, scalar_prefetch = 0 : i64, scratch_operands = 0 : i64, tpu.core_type = #tpu.core_type<tc>, window_params = [{transform_indices = @transform_0, window_bounds = array<i64: 4, 8, 128>}, {transform_indices = @transform_1, window_bounds = array<i64: 8, 128>}, {transform_indices = @transform_2, window_bounds = array<i64: 4, 8, 128>}]} {
    %c0 = arith.constant 0 : index
    %c0_0 = arith.constant 0 : index
    %c0_1 = arith.constant 0 : index
    %0 = vector.load %arg1[%c0, %c0_0, %c0_1] : memref<4x8x128xf32, #tpu.memory_space<vmem>>, vector<4x8x128xf32>
    %c0_2 = arith.constant 0 : index
    %c0_3 = arith.constant 0 : index
    %1 = vector.load %arg2[%c0_2, %c0_3] : memref<8x128xf32, #tpu.memory_space<vmem>>, vector<8x128xf32>
    %2 = vector.shape_cast %1 : vector<8x128xf32> to vector<1x8x128xf32>
    %3 = vector.broadcast %2 : vector<1x8x128xf32> to vector<4x8x128xf32>
    %4 = arith.addf %0, %3 : vector<4x8x128xf32>
    %c0_4 = arith.constant 0 : index
    %c0_5 = arith.constant 0 : index
    %c0_6 = arith.constant 0 : index
    %5 = vector.load %arg3[%c0_4, %c0_5, %c0_6] : memref<4x8x128xf32, #tpu.memory_space<vmem>>, vector<4x8x128xf32>
    tpu.vector_store %arg3[%c0_4, %c0_5, %c0_6], %4 {strides = array<i32>} : memref<4x8x128xf32, #tpu.memory_space<vmem>>, vector<4x8x128xf32>,
    return
  }
  func.func @transform_0(%arg0: i32) -> (i32, i32, i32) {
    %c0_i32 = arith.constant 0 : i32
    %c0_i32_0 = arith.constant 0 : i32
    %c0_i32_1 = arith.constant 0 : i32
    return %c0_i32, %arg0, %c0_i32_0 : i32, i32, i32
  }
  func.func @transform_1(%arg0: i32) -> (i32, i32) {
    %c0_i32 = arith.constant 0 : i32
    %c0_i32_0 = arith.constant 0 : i32
    return %arg0, %c0_i32 : i32, i32
  }
  func.func @transform_2(%arg0: i32) -> (i32, i32, i32) {
    %c0_i32 = arith.constant 0 : i32
    %c0_i32_0 = arith.constant 0 : i32
    %c0_i32_1 = arith.constant 0 : i32
    return %c0_i32, %arg0, %c0_i32_0 : i32, i32, i32
  }
}

</mosaic_0001>

<bundles_post_ra>
// kernel: tpu_custom_call.1
= control target key start
LH: loop header
LB: loop body
LE: loop exit
PB: predicated region body
PF: predicated region fallthrough
CT: control target
= control target key end

     0   :  { %7 = vsyncpa [#allocation3], 0  ;;  %s757_s0 = inlined_call_operand.hbm [shape: f32[4,16,128], index: 0, kind: input, shape index: {}]   ;;  %s758_s1 = inlined_call_operand.hbm [shape: f32[16,128], index: 1, kind: input, shape index: {}]   ;;  %s759_s2 = inlined_call_operand.hbm [shape: f32[4,16,128], index: 2, kind: output, shape index: {}]  }
   0x1   :  { %9 = vsyncpa [#allocation3 + $0x1], 0 }
   0x2   :  { %10 = vsyncpa [#allocation6], 0 }
   0x3   :  { %12 = vsyncpa [#allocation6 + $0x1], 0 }
   0x4   :  { %13 = vsyncpa [#allocation4], 0 }
   0x5   :  { %15 = vsyncpa [#allocation4 + $0x1], 0  ;;  %s548_s9 = smov 0   ;;  %s550_s10 = smov 0  }
   0x6   :  { %s552_s11 = smov 0   ;;  %s554_s12 = smov 0  }
   0x7 LB: > { %s569_s13 = sadd.s32 4294967295, %s522_s12   ;;  %s320_s14 = sadd.s32 4294967294, %s522_s12   ;;  %s522_s12 = sphi %s554_s12, %s777_s12   ;;  %s518_s11 = sphi %s552_s11, %s776_s11   ;;  %s514_s10 = sphi %s550_s10, %s775_s10   ;;  %s510_s9 = sphi %s548_s9, %s774_s9  }
   0x8   : > { %s573_s15 = sadd.s32 1, %s522_s12   ;;  %s28_s16 = sadd.s32 1, %s518_s11 }
   0x9   : > { %s25_s17 = ssub.s32 %s522_s12, %s573_s15  ;;  %p35_p0 = scmp.ne.s32.totalorder %s518_s11, %s514_s10 }
   0xa   : > { %p26_p1 = scmp.eq.s32.totalorder %s25_s17, 0  ;;  %p36_p2 = scmp.eq.s32.totalorder %s522_s12, 0 }
   0xb   : > { %p41_p3 = scmp.ne.s32.totalorder %s514_s10, %s510_s9  ;;  %p42_p4 = scmp.eq.s32.totalorder %s569_s13, 0 }
   0xc   : > { %s585_s18 = scalar_select %p26_p1, %s518_s11, %s28_s16  }
   0xd   : > { %p587_p5 = por %p36_p2, %p35_p0  ;;  %p591_p6 = por %p42_p4, %p41_p3 }
   0xe   : > { %p91_p7 = scmp.eq.s32.totalorder %s569_s13, 1  ;;  %p97_p8 = scmp.eq.s32.totalorder %s320_s14, 1 }
   0xf   : > { %s763_s20 = scalar_select %p591_p6, 1, 0 }
  0x10   : > { %p352_p10 = scmp.lt.s32.totalorder %s522_s12, 2  ;;  %p598_p11 = por %p91_p7, %p35_p0 }
  0x11   : > { %p602_p12 = por %p97_p8, %p41_p3  ;;  %s607_s23 = sand.u32 1, %s518_s11  }
  0x12   : > { %s764_s21 = scalar_select %p598_p11, 1, 0 }
  0x13   : > { %s765_s22 = scalar_select %p602_p12, 1, 0 }
  0x14   : > { %s324_s24 = sshll.u32 %s522_s12, 7  ;;  %s323_s25 = sshll.u32 %s607_s23, 5 }
  0x15   : > { %s616_s28 = scalar_lea.hbm %s757_s0, %s324_s24  ;;  %s121_s29 = scalar_lea.vmem [#allocation2], %s323_s25 }
  0x16   : > { %s127_s30 = sshll.u32 %s121_s29, 4  ;;  %p620_p13 = pnand %p352_p10, %p587_p5  ;;  %s624_s30 = int_to_ptr.vmem [resolvable:$true] %s127_s30 }
  0x17   : > { %s118_s4 = scalar_lea.sflag [#allocation3], %s607_s23  ;;  %s392_s5 = scalar_lea.hbm %s616_s28, 512 }
  0x18   : > { %p393_p1 = scmp.ne.s32.totalorder %s616_s28, %s392_s5  ;;  %p394_p2 = pneg %p620_p13 }
  0x19   : > { %s397_s8 = scalar_lea.hbm %s757_s0, 1024  ;;  %p398_p5 = scmp.lt.u32.totalorder %s616_s28, %s757_s0 }
  0x1a   : > { %p395_p3 = pnand %p394_p2, %p393_p1  ;;  %p399_p7 = scmp.lt.u32.totalorder %s397_s8, %s392_s5 }
  0x1b   : > { %p401_p10 = scmp.lt.u32.totalorder %s392_s5, %s616_s28 }
  0x1c   : > { %p396_p4 = pneg %p395_p3  ;;  %p400_p8 = por %p399_p7, %p398_p5 }
  0x1e   : > { %p402_p9 = por %p401_p10, %p400_p8 }
  0x20   : > { %p403_p0 = pnand %p402_p9, %p396_p4 }
  0x22   : > { %406 = shalt.err (!%p403_p0)
}
  0x23   : > { %s407_s17 = scalar_lea.vmem %s624_s30, 512  ;;  %s524_s19 = smov [#allocation2]  }
  0x24   : > { %p408_p1 = scmp.ne.s32.totalorder %s624_s30, %s407_s17  ;;  %s412_s25 = sshll.u32 %s524_s19, 4  ;;  %s413_s25 = int_to_ptr.vmem [resolvable:$false] %s412_s25 }
  0x25   : > { %s414_s26 = scalar_lea.vmem %s413_s25, 1024  ;;  %p415_p11 = scmp.lt.s32.totalorder %s624_s30, %s413_s25 }
  0x26   : > { %p410_p3 = pnand %p408_p1, %p394_p2  ;;  %p416_p5 = scmp.lt.s32.totalorder %s414_s26, %s407_s17 }
  0x28   : > { %p411_p12 = pneg %p410_p3  ;;  %p417_p7 = por %p416_p5, %p415_p11 }
  0x2a   : > { %p418_p8 = pnand %p417_p7, %p411_p12 }
  0x2c   : > { %421 = shalt.err (!%p418_p8)
}
  0x2d   : > { %s525_s27 = smov 256   ;;  %s526_s29 = smov 128  }
  0x2e   : > { %s527_s5 = smov 8   ;;  %p153_p9 = scmp.lt.s32.totalorder %s522_s12, 3 }
  0x2f   : > { %344 = dma.hbm_to_vmem [thread:$0]  (!%p620_p13), %s616_s28, 512, %s624_s30, %s118_s4, %s525_s27, %s526_s29, %s527_s5  }
  0x30   : > { %s325_s6 = sshll.u32 %s607_s23, 3  ;;  %s662_s14 = scalar_lea.hbm %s758_s1, %s324_s24 }
  0x31   : > { %p767_p11 = scmp.ge.s32.totalorder %s522_s12, 1  ;;  %s141_s17 = scalar_lea.vmem [#allocation5], %s325_s6 }
  0x32   : > { %s148_s19 = sshll.u32 %s141_s17, 4  ;;  %s138_s28 = scalar_lea.sflag [#allocation6], %s607_s23  ;;  %s149_s19 = int_to_ptr.vmem [resolvable:$true] %s148_s19 }
  0x33   : > { %p666_p12 = pnand %p767_p11, %p153_p9  ;;  %s422_s30 = scalar_lea.hbm %s662_s14, 128 }
  0x34   : > { %p423_p0 = scmp.ne.s32.totalorder %s662_s14, %s422_s30  ;;  %s427_s25 = scalar_lea.hbm %s758_s1, 256 }
  0x35   : > { %s768_s16 = scalar_select %p666_p12, 1, 0 }
  0x36   : > { %p425_p4 = pnand %p423_p0, %p394_p2  ;;  %p428_p1 = scmp.lt.u32.totalorder %s662_s14, %s758_s1 }
  0x37   : > { %p429_p3 = scmp.lt.u32.totalorder %s427_s25, %s422_s30  ;;  %p431_p7 = scmp.lt.u32.totalorder %s422_s30, %s662_s14 }
  0x38   : > { %p426_p10 = pneg %p425_p4 }
  0x39   : > { %p430_p5 = por %p429_p3, %p428_p1 }
  0x3b   : > { %p432_p8 = por %p431_p7, %p430_p5 }
  0x3d   : > { %p433_p9 = pnand %p432_p8, %p426_p10 }
  0x3f   : > { %436 = shalt.err (!%p433_p9)
}
  0x40   : > { %s437_s23 = scalar_lea.vmem %s149_s19, 128  ;;  %s528_s29 = smov [#allocation5]  }
  0x41   : > { %p438_p11 = scmp.ne.s32.totalorder %s149_s19, %s437_s23  ;;  %s442_s5 = sshll.u32 %s528_s29, 4  ;;  %s443_s5 = int_to_ptr.vmem [resolvable:$false] %s442_s5 }
  0x42   : > { %s444_s6 = scalar_lea.vmem %s443_s5, 256  ;;  %p445_p6 = scmp.lt.s32.totalorder %s149_s19, %s443_s5 }
  0x43   : > { %p440_p0 = pnand %p438_p11, %p394_p2  ;;  %p446_p12 = scmp.lt.s32.totalorder %s444_s6, %s437_s23 }
  0x45   : > { %p441_p4 = pneg %p440_p0  ;;  %p447_p1 = por %p446_p12, %p445_p6 }
  0x47   : > { %p448_p3 = pnand %p447_p1, %p441_p4 }
  0x49   : > { %451 = shalt.err (!%p448_p3)
}
  0x4a   : > { %347 = dma.hbm_to_vmem [thread:$0]  (!%p620_p13), %s662_s14, 128, %s149_s19, %s138_s28  }
  0x4b   : > { %p769_p10 = scmp.ne.s32.totalorder %s768_s16, 0 }
  0x4c   : > { %s693_s7 = sand.u32 (!%p769_p10), 1, %s514_s10   ;;  %p770_p2 = scmp.ne.s32.totalorder (!%p769_p10), %s763_s20, 0 }
  0x4d   : > { %157 = sbr.rel (%p769_p10) target bundleno = 116 (0x74), region = 28  ;;  %s328_s8 = sshll.u32 (!%p769_p10), %s693_s7, 5 }
  0x4e   : > { %s160_s17 = scalar_lea.sflag (!%p769_p10), [#allocation3], %s693_s7  ;;  %s163_s30 = scalar_lea.vmem (!%p769_p10), [#allocation2], %s328_s8 }
  0x54   : > { %497 = dma.done.wait (%p770_p2), %s160_s17, 512  }
  0x55   : > { %499 = vsyncadd (%p770_p2), %s160_s17, 4294966784  ;;  %s329_s3 = sshll.u32 %s693_s7, 3  ;;  %s169_s14 = scalar_lea.sflag [#allocation6], %s693_s7 }
  0x56   : > { %s172_s16 = scalar_lea.vmem [#allocation5], %s329_s3 }
  0x57   : > { %501 = dma.done.wait (%p770_p2), %s169_s14, 128  }
  0x58   : > { %503 = vsyncadd (%p770_p2), %s169_s14, 4294967168  ;;  %s197_s19 = scalar_lea.vmem [#allocation7], %s328_s8  ;;  %s332_s24 = sshll.u32 %s569_s13, 7  ;;  %v198_v0 = vld [vmem:[%s163_s30] sm:$0xff]  ;;  %v199_v2 = vld [vmem:[%s163_s30 + $0x8] sm:$0xff] }
  0x59   : > { %s224_s28 = sshll.u32 %s197_s19, 4  ;;  %v202_v1 = vld [vmem:[%s172_s16] sm:$0xff]  ;;  %v200_v5 = vld [vmem:[%s163_s30 + $0x10] sm:$0xff]  ;;  %v201_v6 = vld [vmem:[%s163_s30 + $0x18] sm:$0xff]  ;;  %s713_s25 = scalar_lea.hbm %s759_s2, %s332_s24  ;;  %s708_s28 = int_to_ptr.vmem [resolvable:$true] %s224_s28 }
  0x5a   : > { %v203_v3 = vadd.f32 %v202_v1, %v198_v0  ;;  %v204_v4 = vadd.f32 %v202_v1, %v199_v2  ;;  %v205_v7 = vadd.f32 %v202_v1, %v200_v5  ;;  %v206_v8 = vadd.f32 %v202_v1, %v201_v6  ;;  %s212_s13 = scalar_lea.sflag [#allocation4], %s693_s7  ;;  %s452_s26 = scalar_lea.vmem %s708_s28, 512 }
  0x5b   : > { %p453_p6 = scmp.ne.s32.totalorder %s708_s28, %s452_s26  ;;  %p771_p13 = scmp.ne.s32.totalorder %s764_s21, 0 }
  0x5c   : > { %207 = vst [vmem:[%s197_s19] sm:$0xff] %v203_v3  ;;  %208 = vst [vmem:[%s197_s19 + $0x8] sm:$0xff] %v204_v4  ;;  %s529_s27 = smov [#allocation7]  }
  0x5d   : > { %209 = vst [vmem:[%s197_s19 + $0x10] sm:$0xff] %v205_v7  ;;  %210 = vst [vmem:[%s197_s19 + $0x18] sm:$0xff] %v206_v8  ;;  %p454_p12 = pnand %p453_p6, %p771_p13  ;;  %s456_s23 = sshll.u32 %s529_s27, 4  ;;  %s457_s23 = int_to_ptr.vmem [resolvable:$false] %s456_s23 }
  0x5e   : > { %s458_s29 = scalar_lea.vmem %s457_s23, 1024  ;;  %p459_p7 = scmp.lt.s32.totalorder %s708_s28, %s457_s23 }
  0x5f   : > { %p455_p5 = pneg %p454_p12  ;;  %p460_p8 = scmp.lt.s32.totalorder %s458_s29, %s452_s26 }
  0x61   : > { %p461_p9 = por %p460_p8, %p459_p7 }
  0x63   : > { %p462_p11 = pnand %p461_p9, %p455_p5 }
  0x65   : > { %465 = shalt.err (!%p462_p11)
}
  0x66   : > { %s466_s5 = scalar_lea.hbm %s713_s25, 512  ;;  %s470_s17 = scalar_lea.hbm %s759_s2, 1024 }
  0x67   : > { %p467_p0 = scmp.ne.s32.totalorder %s713_s25, %s466_s5  ;;  %p471_p3 = scmp.lt.u32.totalorder %s713_s25, %s759_s2 }
  0x68   : > { %p472_p10 = scmp.lt.u32.totalorder %s470_s17, %s466_s5  ;;  %p474_p6 = scmp.lt.u32.totalorder %s466_s5, %s713_s25 }
  0x69   : > { %p468_p4 = pnand %p467_p0, %p771_p13 }
  0x6a   : > { %p473_p2 = por %p472_p10, %p471_p3 }
  0x6b   : > { %p469_p1 = pneg %p468_p4 }
  0x6c   : > { %p475_p12 = por %p474_p6, %p473_p2 }
  0x6e   : > { %p476_p5 = pnand %p475_p12, %p469_p1 }
  0x70   : > { %479 = shalt.err (!%p476_p5)
}
  0x71   : > { %s530_s14 = smov 128   ;;  %s531_s16 = smov 256  }
  0x72   : > { %s532_s19 = smov 8  }
  0x73   : > { %339 = dma.vmem_to_hbm [thread:$0]  (%p771_p13), %s708_s28, 512, %s713_s25, %s212_s13, %s530_s14, %s531_s16, %s532_s19  }
  0x74 PF: > { %s239_s24 = sand.u32 1, %s510_s9   ;;  %p772_p7 = scmp.ne.s32.totalorder %s765_s22, 0 }
  0x75   : > { %p773_p8 = scmp.ge.s32.totalorder %s522_s12, 2  ;;  %s240_s4 = scalar_lea.sflag [#allocation4], %s239_s24 }
  0x77   : > { %p349_p9 = pnand %p773_p8, %p772_p7 }
  0x79   : > { %505 = dma.done.wait (!%p349_p9), %s240_s4, 512  }
  0x7a   : > { %507 = vsyncadd (!%p349_p9), %s240_s4, 4294966784  ;;  %p18_p11 = scmp.ge.s32.totalorder %s573_s15, 4   ;;  %s774_s9 = smov %s514_s10 }
  0x7b   : > { %s775_s10 = smov %s518_s11  ;;  %s776_s11 = smov %s585_s18 }
  0x7c   : > { %s777_s12 = smov %s573_s15  ;;  %20 = sbr.rel (!%p18_p11) target bundleno = 7 (0x7), region = 86 }
  0x83   :  { %245 = vsyncpa [#allocation3], 1 }
  0x84   :  { %247 = vsyncpa [#allocation3 + $0x1], 1 }
  0x85   :  { %248 = vsyncpa [#allocation6], 1 }
  0x86   :  { %250 = vsyncpa [#allocation6 + $0x1], 1 }
  0x87   :  { %251 = vsyncpa [#allocation4], 1 }
  0x88   :  { %253 = vsyncpa [#allocation4 + $0x1], 1 }

</bundles_post_ra>
